<compile_context>
chip_gen: v5e
topology: v5e:2x2
jax: 0.10.0
libtpu: 0.0.40
codegen_flags: <defaults>
</compile_context>

<pallas_src>
import functools

import jax
import jax.numpy as jnp
from jax.experimental import pallas as pl
from jax.experimental.pallas import tpu as pltpu


def _round_up(v, m):
    return (v + m - 1) // m * m


def _cdiv(a, b):
    return (a + b - 1) // b


def _jacobi_kan_kernel(x_ref, w_ref, o_ref, *, degree, a, b, input_dim, i_pad,
                       mxu_dtype, concat_basis):
    # x_ref: (block_b, input_dim)   w_ref: ((D+1)*i_pad, block_o)
    # o_ref: (block_b, block_o)
    x = jnp.tanh(x_ref[...].astype(jnp.float32))
    rows = x.shape[0]
    pad_cols = i_pad - input_dim
    zpad = (jnp.zeros((rows, pad_cols), mxu_dtype) if pad_cols > 0 else None)

    def rec_coeffs(i):
        theta_k = (2 * i + a + b) * (2 * i + a + b - 1) / (2 * i * (i + a + b))
        theta_k1 = ((2 * i + a + b - 1) * (a * a - b * b)
                    / (2 * i * (i + a + b) * (2 * i + a + b - 2)))
        theta_k2 = ((i + a - 1) * (i + b - 1) * (2 * i + a + b)
                    / (i * (i + a + b) * (2 * i + a + b - 2)))
        return theta_k, theta_k1, theta_k2

    if concat_basis:
        # Build lane-aligned [P_0 | 0 | P_1 | 0 | ...] in mxu_dtype, one fused dot.
        pieces = []

        def emit(p_f32):
            pieces.append(p_f32.astype(mxu_dtype))
            if zpad is not None:
                pieces.append(zpad)

        p_km1 = jnp.ones_like(x)
        emit(p_km1)
        if degree > 0:
            p_k = (a - b + (a + b + 2.0) * x) * 0.5
            emit(p_k)
            for i in range(2, degree + 1):
                tk, tk1, tk2 = rec_coeffs(i)
                p_kp1 = (tk * x + tk1) * p_k - tk2 * p_km1
                p_km1, p_k = p_k, p_kp1
                emit(p_k)
        p = pieces[0] if len(pieces) == 1 else jnp.concatenate(pieces, axis=-1)
        acc = jnp.dot(p, w_ref[...], preferred_element_type=jnp.float32)
    else:
        # Per-degree accumulation: only two recurrence terms live, no big concat.
        def slab(p_f32):
            s = p_f32.astype(mxu_dtype)
            if zpad is not None:
                s = jnp.concatenate([s, zpad], axis=-1)
            return s

        p_km1 = jnp.ones_like(x)
        acc = jnp.dot(slab(p_km1), w_ref[pl.ds(0, i_pad), :],
                      preferred_element_type=jnp.float32)
        if degree > 0:
            p_k = (a - b + (a + b + 2.0) * x) * 0.5
            acc = acc + jnp.dot(slab(p_k), w_ref[pl.ds(i_pad, i_pad), :],
                                preferred_element_type=jnp.float32)
            for i in range(2, degree + 1):
                tk, tk1, tk2 = rec_coeffs(i)
                p_kp1 = (tk * x + tk1) * p_k - tk2 * p_km1
                p_km1, p_k = p_k, p_kp1
                acc = acc + jnp.dot(slab(p_k), w_ref[pl.ds(i * i_pad, i_pad), :],
                                    preferred_element_type=jnp.float32)

    o_ref[...] = acc.astype(o_ref.dtype)


def prepare_jacobi_weights(jacobi_coeffs, *, i_pad, o_pad, mxu_dtype):
    """(I, O, D+1) coeffs -> fused, zero-padded, bf16 ((D+1)*i_pad, o_pad) matrix.

    Row d*i_pad + i multiplies P_d(tanh(x))[:, i]; padded rows/cols are zero.
    Call this once at parameter-init time if you want to hoist it out of the
    per-call path (under jit with constant params XLA folds it anyway).
    """
    input_dim, output_dim, deg_p1 = jacobi_coeffs.shape
    w = jnp.transpose(jacobi_coeffs, (2, 0, 1))                     # (D+1, I, O)
    w = jnp.pad(w, ((0, 0), (0, i_pad - input_dim), (0, o_pad - output_dim)))
    return w.reshape(deg_p1 * i_pad, o_pad).astype(mxu_dtype)


def jacobi_kan_forward(x, jacobi_coeffs, *, degree, a=1.0, b=1.0,
                       mxu_dtype=jnp.bfloat16, block_b=None):
    """Forward of JacobiKANLayer.

    x: any shape with total size divisible by input_dim.
    jacobi_coeffs: (input_dim, output_dim, degree + 1).
    Returns (B, output_dim), B = x.size // input_dim.
    Set mxu_dtype=jnp.float32 for accuracy-sensitive (high degree) configs.
    """
    input_dim, output_dim, deg_p1 = jacobi_coeffs.shape
    assert deg_p1 == degree + 1

    x2d = jnp.reshape(x, (-1, input_dim))          # keep original dtype
    B = x2d.shape[0]
    out_dtype = x2d.dtype

    # Lane-aligned K slabs and 256-aligned output columns (v6e/v7x MXU width;
    # still a 128 multiple for v5e).  Padded rows/cols are zero and sliced off.
    i_pad = _round_up(input_dim, 128)
    o_pad = _round_up(output_dim, 256)
    k_fused = deg_p1 * i_pad

    w = prepare_jacobi_weights(jacobi_coeffs, i_pad=i_pad, o_pad=o_pad,
                               mxu_dtype=mxu_dtype)

    # Concat-fused dot for moderate K; per-degree accumulation for large K
    # (avoids the (block_b, k_fused) concat materialization).
    concat_basis = k_fused <= 4096
    # TODO(synk): for extreme k_fused (>~32K) also tile K on a grid axis marked
    # "arbitrary" with pl.when init/finalize instead of holding the full weight.

    # block_o: prefer 512 / 256 (256-wide MXU passes); 128 only as VMEM fallback.
    block_o = 512 if (o_pad % 512 == 0) else 256

    # block_b: multiple of 16 (bf16 sublane packing), target <=512, prefer a
    # divisor of B so we never materialize a padded copy of x.
    if block_b is None:
        target = 512
        if B <= 16:
            block_b = 16
        else:
            divs = [m for m in range(16, min(target, B) + 1, 16) if B % m == 0]
            block_b = divs[-1] if divs else min(target, _round_up(B, 16))
    block_b = max(16, _round_up(block_b, 16))

    mxu_itemsize = jnp.dtype(mxu_dtype).itemsize
    x_itemsize = x2d.dtype.itemsize
    out_itemsize = jnp.dtype(out_dtype).itemsize

    def est_vmem(bb, bo):
        # Double-buffered pipeline blocks ...
        bufs = 2 * (bb * input_dim * x_itemsize
                    + k_fused * bo * mxu_itemsize
                    + bb * bo * out_itemsize)
        # ... plus in-kernel intermediates: f32 tanh(x), two live f32 recurrence
        # terms, f32 acc, and the concatenated mxu_dtype basis (concat path) or
        # two padded slabs (per-degree path).
        inter = 3 * bb * input_dim * 4 + bb * bo * 4
        if concat_basis:
            inter += bb * k_fused * mxu_itemsize
        else:
            inter += 2 * bb * i_pad * mxu_itemsize
        return bufs + inter

    VMEM_SOFT = 40 << 20            # leaves headroom on v7x (64 MiB physical)
    while est_vmem(block_b, block_o) > VMEM_SOFT and block_b > 16:
        block_b = max(16, (block_b // 2) // 16 * 16)
    while est_vmem(block_b, block_o) > VMEM_SOFT and block_o > 128:
        block_o //= 2

    o_blocks = o_pad // block_o
    b_blocks = _cdiv(B, block_b)
    # Guarantee >= 2 grid steps when possible (v7x has 2 TensorCores).
    if o_blocks * b_blocks == 1 and block_b % 32 == 0:
        block_b //= 2
        b_blocks = _cdiv(B, block_b)

    b_pad = b_blocks * block_b
    if b_pad != B:
        x2d = jnp.pad(x2d, ((0, b_pad - B), (0, 0)))

    est = est_vmem(block_b, block_o)
    vmem_limit = None
    if est > (24 << 20):
        vmem_limit = int(min(est * 3 // 2 + (2 << 20), 48 << 20))

    kernel = functools.partial(
        _jacobi_kan_kernel, degree=degree, a=float(a), b=float(b),
        input_dim=input_dim, i_pad=i_pad, mxu_dtype=mxu_dtype,
        concat_basis=concat_basis)

    # Grid order: output blocks outer, batch inner -> the weight block index
    # (0, j) is constant across consecutive batch steps, so Pallas revisits the
    # resident tile instead of re-DMA'ing it (fetched once when o_blocks == 1).
    # TODO(synk): sweep pipeline_mode=pl.Buffered(3) on the x spec for tiny
    # degree/I shapes where the kernel is DMA-latency bound.
    out = pl.pallas_call(
        kernel,
        out_shape=jax.ShapeDtypeStruct((b_pad, o_pad), out_dtype),
        grid_spec=pltpu.PrefetchScalarGridSpec(
            num_scalar_prefetch=0,
            grid=(o_blocks, b_blocks),
            in_specs=[
                pl.BlockSpec((block_b, input_dim), lambda j, i: (i, 0)),
                pl.BlockSpec((k_fused, block_o), lambda j, i: (0, j)),
            ],
            out_specs=pl.BlockSpec((block_b, block_o), lambda j, i: (i, j)),
        ),
        compiler_params=pltpu.CompilerParams(
            dimension_semantics=("parallel", "parallel"),
            vmem_limit_bytes=vmem_limit),
    )(x2d, w)

    return out[:B, :output_dim]


def _reference(x, coeffs, degree, a, b):
    """Pure-JAX f32 reference mirroring the PyTorch forward."""
    input_dim = coeffs.shape[0]
    xr = jnp.reshape(x, (-1, input_dim)).astype(jnp.float32)
    xr = jnp.tanh(xr)
    polys = [jnp.ones_like(xr)]
    if degree > 0:
        polys.append((a - b + (a + b + 2.0) * xr) / 2.0)
    for i in range(2, degree + 1):
        theta_k = (2 * i + a + b) * (2 * i + a + b - 1) / (2 * i * (i + a + b))
        theta_k1 = ((2 * i + a + b - 1) * (a * a - b * b)
                    / (2 * i * (i + a + b) * (2 * i + a + b - 2)))
        theta_k2 = ((i + a - 1) * (i + b - 1) * (2 * i + a + b)
                    / (i * (i + a + b) * (2 * i + a + b - 2)))
        polys.append((theta_k * xr + theta_k1) * polys[-1] - theta_k2 * polys[-2])
    jac = jnp.stack(polys, axis=-1)  # (B, I, D+1)
    return jnp.einsum('bid,iod->bo', jac, coeffs.astype(jnp.float32))


if __name__ == "__main__":
    # Module config (small, synthetic)
    input_dim, output_dim, degree = 32, 16, 3
    a_param, b_param = 1.0, 1.0

    key = jax.random.PRNGKey(0)
    kx, kw = jax.random.split(key)

    # x: (batch=8, seq=8, input_dim=32) -> flattened to (64, 32) rows
    x = jax.random.normal(kx, (8, 8, input_dim), dtype=jnp.float32)

    # deterministic init matching nn.init.normal_(mean=0, std=1/(I*(D+1)))
    std = 1.0 / (input_dim * (degree + 1))
    jacobi_coeffs = std * jax.random.normal(
        kw, (input_dim, output_dim, degree + 1), dtype=jnp.float32)

    y = jacobi_kan_forward(x, jacobi_coeffs, degree=degree,
                           a=a_param, b=b_param)
    y = jax.block_until_ready(y)

    y_ref = _reference(x, jacobi_coeffs, degree, a_param, b_param)
    assert y.shape == (64, output_dim)
    # bf16 MXU operands / f32 accumulation -> relaxed tolerance.
    assert jnp.allclose(y, y_ref, atol=5e-3, rtol=1e-2), \
        float(jnp.max(jnp.abs(y - y_ref)))

    print("KERNEL_OK")
</pallas_src>

<mosaic_0001>
module attributes {stable_mosaic.version = 11 : i64} {
  func.func @_jacobi_kan_kernel(%arg0: i32, %arg1: i32, %arg2: memref<32x32xf32, #tpu.memory_space<vmem>>, %arg3: memref<512x256xbf16, #tpu.memory_space<vmem>>, %arg4: memref<32x256xf32, #tpu.memory_space<vmem>>) attributes {dimension_semantics = [#tpu.dimension_semantics<parallel>, #tpu.dimension_semantics<parallel>], iteration_bounds = array<i64: 1, 2>, scalar_prefetch = 0 : i64, scratch_operands = 0 : i64, tpu.core_type = #tpu.core_type<tc>, window_params = [{transform_indices = @transform_0, window_bounds = array<i64: 32, 32>}, {transform_indices = @transform_1, window_bounds = array<i64: 512, 256>}, {transform_indices = @transform_2, window_bounds = array<i64: 32, 256>}]} {
    %c0 = arith.constant 0 : index
    %c0_0 = arith.constant 0 : index
    %0 = vector.load %arg2[%c0, %c0_0] : memref<32x32xf32, #tpu.memory_space<vmem>>, vector<32x32xf32>
    %1 = math.tanh %0 : vector<32x32xf32>
    %cst = arith.constant 0.000000e+00 : bf16
    %2 = vector.broadcast %cst : bf16 to vector<32x96xbf16>
    %cst_1 = arith.constant 1.000000e+00 : f32
    %3 = vector.broadcast %cst_1 : f32 to vector<32x32xf32>
    %4 = arith.truncf %3 : vector<32x32xf32> to vector<32x32xbf16>
    %cst_2 = arith.constant 4.000000e+00 : f32
    %5 = vector.broadcast %cst_2 : f32 to vector<32x32xf32>
    %6 = arith.mulf %5, %1 : vector<32x32xf32>
    %cst_3 = arith.constant 0.000000e+00 : f32
    %7 = vector.broadcast %cst_3 : f32 to vector<32x32xf32>
    %8 = arith.addf %7, %6 : vector<32x32xf32>
    %cst_4 = arith.constant 5.000000e-01 : f32
    %9 = vector.broadcast %cst_4 : f32 to vector<32x32xf32>
    %10 = arith.mulf %8, %9 : vector<32x32xf32>
    %11 = arith.truncf %10 : vector<32x32xf32> to vector<32x32xbf16>
    %cst_5 = arith.constant 1.875000e+00 : f32
    %12 = vector.broadcast %cst_5 : f32 to vector<32x32xf32>
    %13 = arith.mulf %12, %1 : vector<32x32xf32>
    %cst_6 = arith.constant 0.000000e+00 : f32
    %14 = vector.broadcast %cst_6 : f32 to vector<32x32xf32>
    %15 = arith.addf %13, %14 : vector<32x32xf32>
    %16 = arith.mulf %15, %10 : vector<32x32xf32>
    %cst_7 = arith.constant 7.500000e-01 : f32
    %17 = vector.broadcast %cst_7 : f32 to vector<32x32xf32>
    %18 = arith.mulf %17, %3 : vector<32x32xf32>
    %19 = arith.subf %16, %18 : vector<32x32xf32>
    %20 = arith.truncf %19 : vector<32x32xf32> to vector<32x32xbf16>
    %cst_8 = arith.constant 1.86666667 : f32
    %21 = vector.broadcast %cst_8 : f32 to vector<32x32xf32>
    %22 = arith.mulf %21, %1 : vector<32x32xf32>
    %cst_9 = arith.constant 0.000000e+00 : f32
    %23 = vector.broadcast %cst_9 : f32 to vector<32x32xf32>
    %24 = arith.addf %22, %23 : vector<32x32xf32>
    %25 = arith.mulf %24, %19 : vector<32x32xf32>
    %cst_10 = arith.constant 8.000000e-01 : f32
    %26 = vector.broadcast %cst_10 : f32 to vector<32x32xf32>
    %27 = arith.mulf %26, %10 : vector<32x32xf32>
    %28 = arith.subf %25, %27 : vector<32x32xf32>
    %29 = arith.truncf %28 : vector<32x32xf32> to vector<32x32xbf16>
    %30 = tpu.concatenate %4, %2, %11, %2, %20, %2, %29, %2 in 1 : vector<32x32xbf16>, vector<32x96xbf16>, vector<32x32xbf16>, vector<32x96xbf16>, vector<32x32xbf16>, vector<32x96xbf16>, vector<32x32xbf16>, vector<32x96xbf16> -> vector<32x512xbf16>
    %c0_11 = arith.constant 0 : index
    %c0_12 = arith.constant 0 : index
    %31 = vector.load %arg3[%c0_11, %c0_12] : memref<512x256xbf16, #tpu.memory_space<vmem>>, vector<512x256xbf16>
    %cst_13 = arith.constant dense<0.000000e+00> : vector<32x256xf32>
    %32 = tpu.matmul %30, %31, %cst_13 {dimension_numbers = #tpu.dot_dimension_numbers<[1], [0], [0], [1], [0, 0, 1, 1], [], []>} : vector<32x512xbf16>, vector<512x256xbf16>, vector<32x256xf32> -> vector<32x256xf32>
    %c0_14 = arith.constant 0 : index
    %c0_15 = arith.constant 0 : index
    %33 = vector.load %arg4[%c0_14, %c0_15] : memref<32x256xf32, #tpu.memory_space<vmem>>, vector<32x256xf32>
    tpu.vector_store %arg4[%c0_14, %c0_15], %32 {strides = array<i32>} : memref<32x256xf32, #tpu.memory_space<vmem>>, vector<32x256xf32>,
    return
  }
  func.func @transform_0(%arg0: i32, %arg1: i32) -> (i32, i32) {
    %c0_i32 = arith.constant 0 : i32
    %c0_i32_0 = arith.constant 0 : i32
    return %arg1, %c0_i32 : i32, i32
  }
  func.func @transform_1(%arg0: i32, %arg1: i32) -> (i32, i32) {
    %c0_i32 = arith.constant 0 : i32
    %c0_i32_0 = arith.constant 0 : i32
    return %c0_i32, %arg0 : i32, i32
  }
  func.func @transform_2(%arg0: i32, %arg1: i32) -> (i32, i32) {
    %c0_i32 = arith.constant 0 : i32
    return %arg1, %arg0 : i32, i32
  }
}

</mosaic_0001>

<bundles_post_ra>
// kernel: tpu_custom_call.1
= control target key start
LH: loop header
LB: loop body
LE: loop exit
PB: predicated region body
PF: predicated region fallthrough
CT: control target
= control target key end

     0   :  { %7 = vsyncpa [#allocation3], 0  ;;  %s1726_s0 = inlined_call_operand.vmem [shape: f32[64,32], index: 0, kind: input, shape index: {}]   ;;  %s1727_s1 = inlined_call_operand.hbm [shape: bf16[512,256], index: 1, kind: input, shape index: {}]   ;;  %s1728_s2 = inlined_call_operand.hbm [shape: f32[64,256], index: 2, kind: output, shape index: {}]  }
   0x1   :  { %8 = vsyncpa [#allocation4], 0 }
   0x2   :  { %10 = vsyncpa [#allocation4 + $0x1], 0  ;;  %s1531_s9 = smov 0   ;;  %s1533_s10 = smov 0  }
   0x3   :  { %s1535_s11 = smov 0   ;;  %s1537_s12 = smov 0  }
   0x4   :  { %s1539_s13 = smov 0   ;;  %s1541_s14 = smov 0  }
   0x5 LB: > { %s959_s15 = sadd.s32 4294967295, %s1508_s14   ;;  %s960_s16 = sadd.s32 4294967294, %s1508_s14   ;;  %s1508_s14 = sphi %s1541_s14, %s16_s14   ;;  %s1504_s13 = sphi %s1539_s13, %s1736_s13   ;;  %s1500_s12 = sphi %s1537_s12, %s1735_s12   ;;  %s1496_s11 = sphi %s1535_s11, %s1734_s11   ;;  %s1492_s10 = sphi %s1533_s10, %s1733_s10   ;;  %s1488_s9 = sphi %s1531_s9, %s1732_s9  }
   0x6   : > { %s25_s17 = sadd.s32 1, %s1504_s13  ;;  %s89_s18 = sadd.s32 1, %s1496_s11 }
   0x7   : > { %p26_p0 = scmp.ge.s32.totalorder %s25_s17, 2  ;;  %p99_p1 = scmp.ne.s32.totalorder %s1496_s11, %s1492_s10 }
   0x8   : > { %p100_p2 = scmp.eq.s32.totalorder %s959_s15, 1  ;;  %p105_p3 = scmp.ne.s32.totalorder %s1492_s10, %s1488_s9 }
   0x9   : > { %s1738_s17 = smov (%p26_p0, %s25_s17), 0  ;;  %p106_p5 = scmp.eq.s32.totalorder %s960_s16, 1 }
   0xa   : > { %p1571_p4 = por %p100_p2, %p99_p1  ;;  %s84_s20 = ssub.s32 %s1504_s13, %s1738_s17 }
   0xb   : > { %p961_p6 = scmp.ge.s32.totalorder %s1508_s14, 1  ;;  %p87_p7 = scmp.eq.s32.totalorder %s84_s20, 0 }
   0xc   : > { %p1578_p8 = por %p106_p5, %p105_p3  ;;  %p113_p9 = scmp.lt.s32.totalorder %s1508_s14, 3 }
   0xd   : > { %s1584_s22 = scalar_select %p87_p7, %s1496_s11, %s89_s18  }
   0xe   : > { %p114_p10 = pnand %p961_p6, %p113_p9  ;;  %p1331_p11 = scmp.eq.s32.totalorder %s959_s15, 0 }
   0xf   : > { %s127_s25 = sshll.u32 %s1727_s1, 4  ;;  %s1510_s26 = smov [#allocation2]   ;;  %s128_s25 = int_to_ptr.hbm [resolvable:$true] %s127_s25 }
  0x10   : > { %p1323_p12 = pneg %p114_p10  ;;  %s129_s27 = sshll.u32 %s1510_s26, 4  ;;  %s130_s27 = int_to_ptr.vmem [resolvable:$true] %s129_s27 }
  0x11   : > { %s1511_s28 = smov 128   ;;  %s1512_s29 = smov 8  }
  0x12   : > { %p1324_p13 = pnand %p1331_p11, %p1323_p12  ;;  %154 = sbr.rel (%p114_p10) target bundleno = 266 (0x10a), region = 28 }
  0x14   : > { %1326 = dma.hbm_to_vmem [thread:$0]  (!%p1324_p13), %s128_s25, 8192, %s130_s27, [#allocation3], %s1511_s28, %s1511_s28, %s1512_s29  }
  0x17   : > { %1479 = dma.done.wait (%p1331_p11), [#allocation3], 8192  }
  0x18   : > { %1481 = vsyncadd (%p1331_p11), [#allocation3], 4294959104  ;;  %s967_s30 = sshll.u32 %s1500_s12, 2  ;;  %v1031_v0 = vld [vmem:[#allocation2 + $0x70] sm:$0xf]  ;;  %vm286_vm0 = vcmask 261120  }
  0x19   : > { %p1592_p0 = scmp.lt.s32.totalorder %s967_s30, 7  ;;  %v1266_v1 = vld [vmem:[#allocation2 + $0x74] sm:$0xf0]  ;;  %v1095_v2 = vld [vmem:[#allocation2 + $0xf0] sm:$0xf]  ;;  %s174_s8 = sand.u32 1, %s1492_s10  }
  0x1a   : > { %v1032_v3 = vor.u32 %v1266_v1, %v1031_v0  ;;  %v1282_v4 = vld [vmem:[#allocation2 + $0xf4] sm:$0xf0]  ;;  %v1159_v5 = vld [vmem:[#allocation2 + $0x170] sm:$0xf]  ;;  %v1023_v11 = vld [vmem:[#allocation2 + $0x60] sm:$0xf] }
  0x1b   : > { %v1298_v6 = vld [vmem:[#allocation2 + $0x174] sm:$0xf0]  ;;  %v1096_v7 = vor.u32 %v1282_v4, %v1095_v2  ;;  %v1223_v9 = vld [vmem:[#allocation2 + $0x1f0] sm:$0xf]  ;;  %v1264_v13 = vld [vmem:[#allocation2 + $0x64] sm:$0xf0] }
  0x1c   : > { %v1160_v8 = vor.u32 %v1298_v6, %v1159_v5  ;;  %v1314_v10 = vld [vmem:[#allocation2 + $0x1f4] sm:$0xf0]  ;;  %693 = vmatpush.bf16.msra.mxu0 %v1032_v3  ;;  %v1087_v14 = vld [vmem:[#allocation2 + $0xe0] sm:$0xf]  ;;  %v1280_v15 = vld [vmem:[#allocation2 + $0xe4] sm:$0xf0]  ;;  %v1024_v16 = vor.u32 %v1264_v13, %v1023_v11 }
  0x1d   : > { %v1224_v12 = vor.u32 %v1314_v10, %v1223_v9  ;;  %712 = vmatpush.bf16.msra.mxu1 %v1096_v7  ;;  %v1088_v17 = vor.u32 %v1280_v15, %v1087_v14  ;;  %v1151_v18 = vld [vmem:[#allocation2 + $0x160] sm:$0xf]  ;;  %v1296_v19 = vld [vmem:[#allocation2 + $0x164] sm:$0xf0]  ;;  %v1015_v23 = vld [vmem:[#allocation2 + $0x50] sm:$0xf] }
  0x1e   : > { %731 = vmatpush.bf16.msra.mxu2 %v1160_v8  ;;  %v1215_v20 = vld [vmem:[#allocation2 + $0x1e0] sm:$0xf]  ;;  %v1152_v21 = vor.u32 %v1296_v19, %v1151_v18  ;;  %v1312_v22 = vld [vmem:[#allocation2 + $0x1e4] sm:$0xf0]  ;;  %v1262_v24 = vld [vmem:[#allocation2 + $0x54] sm:$0xf0] }
  0x1f   : > { %750 = vmatpush.bf16.msra.mxu3 %v1224_v12  ;;  %v1216_v25 = vor.u32 %v1312_v22, %v1215_v20  ;;  %v1079_v26 = vld [vmem:[#allocation2 + $0xd0] sm:$0xf]  ;;  %v1278_v27 = vld [vmem:[#allocation2 + $0xd4] sm:$0xf0]  ;;  %v1016_v29 = vor.u32 %v1262_v24, %v1015_v23  ;;  %v1007_v35 = vld [vmem:[#allocation2 + $0x40] sm:$0xf] }
  0x20   : > { %v1143_v28 = vld [vmem:[#allocation2 + $0x150] sm:$0xf]  ;;  %694 = vmatpush.bf16.msra.mxu0 %v1024_v16  ;;  %v1294_v30 = vld [vmem:[#allocation2 + $0x154] sm:$0xf0]  ;;  %v1080_v33 = vor.u32 %v1278_v27, %v1079_v26  ;;  %v1260_v36 = vld [vmem:[#allocation2 + $0x44] sm:$0xf0] }
  0x21   : > { %v1207_v31 = vld [vmem:[#allocation2 + $0x1d0] sm:$0xf]  ;;  %v1310_v32 = vld [vmem:[#allocation2 + $0x1d4] sm:$0xf0]  ;;  %713 = vmatpush.bf16.msra.mxu1 %v1088_v17  ;;  %v1144_v34 = vor.u32 %v1294_v30, %v1143_v28  ;;  %v1071_v37 = vld [vmem:[#allocation2 + $0xc0] sm:$0xf]  ;;  %v1008_v44 = vor.u32 %v1260_v36, %v1007_v35 }
  0x22   : > { %732 = vmatpush.bf16.msra.mxu2 %v1152_v21  ;;  %v1208_v38 = vor.u32 %v1310_v32, %v1207_v31  ;;  %v1276_v39 = vld [vmem:[#allocation2 + $0xc4] sm:$0xf0]  ;;  %v1135_v40 = vld [vmem:[#allocation2 + $0x140] sm:$0xf]  ;;  %s1740_s30 = smov (!%p1592_p0, %s967_s30), 7  ;;  %s966_s15 = sshll.u32 %s174_s8, 6 }
  0x23   : > { %751 = vmatpush.bf16.msra.mxu3 %v1216_v25  ;;  %v1292_v41 = vld [vmem:[#allocation2 + $0x144] sm:$0xf0]  ;;  %v1199_v42 = vld [vmem:[#allocation2 + $0x1c0] sm:$0xf]  ;;  %v1072_v45 = vor.u32 %v1276_v39, %v1071_v37  ;;  %v999_v47 = vld [vmem:[#allocation2 + $0x30] sm:$0xf] }
  0x24   : > { %v1308_v43 = vld [vmem:[#allocation2 + $0x1c4] sm:$0xf0]  ;;  %695 = vmatpush.bf16.msra.mxu0 %v1016_v29  ;;  %v1136_v46 = vor.u32 %v1292_v41, %v1135_v40  ;;  %v1258_v48 = vld [vmem:[#allocation2 + $0x34] sm:$0xf0]  ;;  %v1063_v49 = vld [vmem:[#allocation2 + $0xb0] sm:$0xf] }
  0x25   : > { %714 = vmatpush.bf16.msra.mxu1 %v1080_v33  ;;  %v1200_v50 = vor.u32 %v1308_v43, %v1199_v42  ;;  %v1274_v51 = vld [vmem:[#allocation2 + $0xb4] sm:$0xf0]  ;;  %v1127_v52 = vld [vmem:[#allocation2 + $0x130] sm:$0xf]  ;;  %v1000_v56 = vor.u32 %v1258_v48, %v999_v47  ;;  %s968_s4 = sshll.u32 %s1740_s30, 3  ;;  %s1677_s16 = scalar_lea.vmem [#allocation5], %s966_s15 }
  0x26   : > { %733 = vmatpush.bf16.msra.mxu2 %v1144_v34  ;;  %v1290_v53 = vld [vmem:[#allocation2 + $0x134] sm:$0xf0]  ;;  %v1191_v54 = vld [vmem:[#allocation2 + $0x1b0] sm:$0xf]  ;;  %v1064_v57 = vor.u32 %v1274_v51, %v1063_v49  ;;  %v991_v59 = vld [vmem:[#allocation2 + $0x20] sm:$0xf]  ;;  %s1606_s7 = scalar_lea.vmem %s1726_s0, %s968_s4 }
  0x27   : > { %752 = vmatpush.bf16.msra.mxu3 %v1208_v38  ;;  %v1306_v55 = vld [vmem:[#allocation2 + $0x1b4] sm:$0xf0]  ;;  %v1128_v58 = vor.u32 %v1290_v53, %v1127_v52  ;;  %v1256_v60 = vld [vmem:[#allocation2 + $0x24] sm:$0xf0]  ;;  %v1055_v61 = vld [vmem:[#allocation2 + $0xa0] sm:$0xf] }
  0x28   : > { %696 = vmatpush.bf16.msra.mxu0 %v1008_v44  ;;  %v1192_v62 = vor.u32 %v1306_v55, %v1191_v54  ;;  %v1272_v63 = vld [vmem:[#allocation2 + $0xa4] sm:$0xf0]  ;;  %v1119_v0 = vld [vmem:[#allocation2 + $0x120] sm:$0xf]  ;;  %v992_v4 = vor.u32 %v1256_v60, %v991_v59  ;;  %v983_v5 = vld [vmem:[#allocation2 + $0x10] sm:$0xf] }
  0x29   : > { %715 = vmatpush.bf16.msra.mxu1 %v1072_v45  ;;  %v1288_v1 = vld [vmem:[#allocation2 + $0x124] sm:$0xf0]  ;;  %v1183_v2 = vld [vmem:[#allocation2 + $0x1a0] sm:$0xf]  ;;  %v1254_v6 = vld [vmem:[#allocation2 + $0x14] sm:$0xf0]  ;;  %v1056_v8 = vor.u32 %v1272_v63, %v1055_v61 }
  0x2a   : > { %734 = vmatpush.bf16.msra.mxu2 %v1136_v46  ;;  %v1304_v3 = vld [vmem:[#allocation2 + $0x1a4] sm:$0xf0]  ;;  %v1047_v7 = vld [vmem:[#allocation2 + $0x90] sm:$0xf]  ;;  %v1120_v9 = vor.u32 %v1288_v1, %v1119_v0  ;;  %v1270_v10 = vld [vmem:[#allocation2 + $0x94] sm:$0xf0]  ;;  %v984_v20 = vor.u32 %v1254_v6, %v983_v5 }
  0x2b   : > { %753 = vmatpush.bf16.msra.mxu3 %v1200_v50  ;;  %v1111_v11 = vld [vmem:[#allocation2 + $0x110] sm:$0xf]  ;;  %v1286_v12 = vld [vmem:[#allocation2 + $0x114] sm:$0xf0]  ;;  %v1184_v13 = vor.u32 %v1304_v3, %v1183_v2  ;;  %v188_v16 = vld [vmem:[%s1606_s7] sm:$0xff]  ;;  %v1048_v25 = vor.u32 %v1270_v10, %v1047_v7  ;;  %s1316_s18 = sshll.u32 %s1500_s12, 6 }
  0x2c   : > { %697 = vmatpush.bf16.msra.mxu0 %v1000_v56  ;;  %v1175_v14 = vld [vmem:[#allocation2 + $0x190] sm:$0xf]  ;;  %v1302_v15 = vld [vmem:[#allocation2 + $0x194] sm:$0xf0]  ;;  %v975_v17 = vld [vmem:[#allocation2] sm:$0xf]  ;;  %1388 = vtanh.f32 %v188_v16  ;;  %v1112_v26 = vor.u32 %v1286_v12, %v1111_v11  ;;  %s868_s24 = scalar_lea.hbm %s1728_s2, %s1316_s18 }
  0x2d   : > { %716 = vmatpush.bf16.msra.mxu1 %v1064_v57  ;;  %v1252_v18 = vld [vmem:[#allocation2 + $0x4] sm:$0xf0]  ;;  %v1039_v21 = vld [vmem:[#allocation2 + $0x80] sm:$0xf]  ;;  %v1176_v29 = vor.u32 %v1302_v15, %v1175_v14  ;;  %v1297_v30 = vld [vmem:[#allocation2 + $0x174] sm:$0xf] }
  0x2e   : > { %735 = vmatpush.bf16.msra.mxu2 %v1128_v58  ;;  %v189_v19 = vld [vmem:[%s1606_s7 + $0x8] sm:$0xff]  ;;  %v1103_v23 = vld [vmem:[#allocation2 + $0x100] sm:$0xf]  ;;  %v1161_v31 = vld [vmem:[#allocation2 + $0x178] sm:$0xf0]  ;;  %v976_v35 = vor.u32 %v1252_v18, %v975_v17  ;;  %s869_s25 = sshll.u32 %s1677_s16, 4  ;;  %s870_s25 = int_to_ptr.vmem [resolvable:$true] %s869_s25 }
  0x2f   : > { %754 = vmatpush.bf16.msra.mxu3 %v1192_v62  ;;  %v1268_v22 = vld [vmem:[#allocation2 + $0x84] sm:$0xf0]  ;;  %1390 = vtanh.f32 %v189_v19  ;;  %v1167_v27 = vld [vmem:[#allocation2 + $0x180] sm:$0xf]  ;;  %v1610_v32 = vld [vmem:[#allocation2 + $0x74] sm:$0xf]  ;;  %v1164_v49 = vor.u32 %v1297_v30, %v1161_v31 }
  0x30   : > { %698 = vmatpush.bf16.msra.mxu0 %v992_v4  ;;  %v1284_v24 = vld [vmem:[#allocation2 + $0x104] sm:$0xf0]  ;;  %v1612_v33 = vld [vmem:[#allocation2 + $0x78] sm:$0xf0]  ;;  %v1281_v34 = vld [vmem:[#allocation2 + $0xf4] sm:$0xf]  ;;  %v1040_v40 = vor.u32 %v1268_v22, %v1039_v21 }
  0x31   : > { %717 = vmatpush.bf16.msra.mxu1 %v1056_v8  ;;  %v1300_v28 = vld [vmem:[#allocation2 + $0x184] sm:$0xf0]  ;;  %v1097_v36 = vld [vmem:[#allocation2 + $0xf8] sm:$0xf0]  ;;  %v1313_v37 = vld [vmem:[#allocation2 + $0x1f4] sm:$0xf]  ;;  %v1104_v41 = vor.u32 %v1284_v24, %v1103_v23  ;;  %v1036_v58 = vor.u32 %v1610_v32, %v1612_v33 }
  0x32   : > { %736 = vmatpush.bf16.msra.mxu2 %v1120_v9  ;;  %v1225_v38 = vld [vmem:[#allocation2 + $0x1f8] sm:$0xf0]  ;;  %v1389_v39 = vpop.eup %1388  ;;  %v1295_v42 = vld [vmem:[#allocation2 + $0x164] sm:$0xf]  ;;  %v1153_v43 = vld [vmem:[#allocation2 + $0x168] sm:$0xf0]  ;;  %v1168_v46 = vor.u32 %v1300_v28, %v1167_v27  ;;  %v1100_v54 = vor.u32 %v1281_v34, %v1097_v36 }
  0x33   : > { %755 = vmatpush.bf16.msra.mxu3 %v1184_v13  ;;  %v1614_v44 = vld [vmem:[#allocation2 + $0x64] sm:$0xf]  ;;  %v196_v47 = vmul.f32 4.0, %v1389_v39  ;;  %v212_v48 = vmul.f32 1.875, %v1389_v39  ;;  %v1616_v50 = vld [vmem:[#allocation2 + $0x68] sm:$0xf0]  ;;  %v1228_v59 = vor.u32 %v1313_v37, %v1225_v38  ;;  %v1156_v0 = vor.u32 %v1295_v42, %v1153_v43 }
  0x34   : > { %699 = vmatpush.bf16.msra.mxu0 %v984_v20  ;;  %v1279_v51 = vld [vmem:[#allocation2 + $0xe4] sm:$0xf]  ;;  %v1089_v55 = vld [vmem:[#allocation2 + $0xe8] sm:$0xf0]  ;;  %v1622_v61 = vld [vmem:[#allocation2 + $0x154] sm:$0xf]  ;;  %v1028_v1 = vor.u32 %v1614_v44, %v1616_v50 }
  0x35   : > { %718 = vmatpush.bf16.msra.mxu1 %v1048_v25  ;;  %v1391_v45 = vpop.eup %1390  ;;  %v1618_v56 = vld [vmem:[#allocation2 + $0x1e4] sm:$0xf]  ;;  %v204_v57 = vmul.f32 0.5, %v196_v47  ;;  %v1217_v60 = vld [vmem:[#allocation2 + $0x1e8] sm:$0xf0]  ;;  %v190_v62 = vld [vmem:[%s1606_s7 + $0x10] sm:$0xff]  ;;  %v1092_v8 = vor.u32 %v1279_v51, %v1089_v55 }
  0x36   : > { %737 = vmatpush.bf16.msra.mxu2 %v1112_v26  ;;  %v197_v52 = vmul.f32 4.0, %v1391_v45  ;;  %v213_v53 = vmul.f32 1.875, %v1391_v45  ;;  %v1627_v2 = vld [vmem:[#allocation2 + $0x158] sm:$0xf0]  ;;  %v1629_v3 = vld [vmem:[#allocation2 + $0x54] sm:$0xf]  ;;  %1392 = vtanh.f32 %v190_v62  ;;  %v1220_v15 = vor.u32 %v1618_v56, %v1217_v60 }
  0x37   : > { %756 = vmatpush.bf16.msra.mxu3 %v1176_v29  ;;  %v191_v4 = vld [vmem:[%s1606_s7 + $0x18] sm:$0xff]  ;;  %v208_v5 = vpack.c.bf16 %v204_v57, %v204_v57  ;;  %v220_v6 = vmul.f32 %v212_v48, %v204_v57  ;;  %v232_v7 = vmul.f32 1.8666667, %v1389_v39  ;;  %v1277_v10 = vld [vmem:[#allocation2 + $0xd4] sm:$0xf]  ;;  %v1148_v25 = vor.u32 %v1622_v61, %v1627_v2  ;;  %s871_s26 = sshll.u32 %s868_s24, 4  ;;  %s872_s26 = int_to_ptr.hbm [resolvable:$true] %s871_s26 }
  0x38   : > { %700 = vmatpush.bf16.msra.mxu0 %v976_v35  ;;  %v205_v63 = vmul.f32 0.5, %v197_v52  ;;  %v1632_v9 = vld [vmem:[#allocation2 + $0x58] sm:$0xf0]  ;;  %v1513_v11 = vmov 1065369472   ;;  %1394 = vtanh.f32 %v191_v4  ;;  %s854_s27 = scalar_lea.sflag [#allocation4], %s174_s8 }
  0x39   : > { %719 = vmatpush.bf16.msra.mxu1 %v1040_v40  ;;  %v233_v14 = vmul.f32 1.8666667, %v1391_v45  ;;  %v1081_v16 = vld [vmem:[#allocation2 + $0xd8] sm:$0xf0]  ;;  %v1309_v17 = vld [vmem:[#allocation2 + $0x1d4] sm:$0xf]  ;;  %v260_v18 = vunpack.c.l.b16 %v208_v5  ;;  %v1020_v28 = vor.u32 %v1629_v3, %v1632_v9 }
  0x3a   : > { %738 = vmatpush.bf16.msra.mxu2 %v1104_v41  ;;  %v209_v12 = vpack.c.bf16 %v205_v63, %v205_v63  ;;  %v221_v13 = vmul.f32 %v213_v53, %v205_v63  ;;  %v969_v19 = vadd.f32 -0.75, %v220_v6  ;;  %v244_v20 = vmul.f32 0.8, %v204_v57  ;;  %v1209_v21 = vld [vmem:[#allocation2 + $0x1d8] sm:$0xf0]  ;;  %s1440_s12 = sshra.s32 %s872_s26, 4  ;;  %s1441_s12 = int_to_ptr.hbm [resolvable:$true] %s1440_s12 }
  0x3b   : > { %757 = vmatpush.bf16.msra.mxu3 %v1168_v46  ;;  %1229 = vmatmul.msk.bf16.vlgmr.msra.gmra.mxu0 %vm286_vm0, %v1513_v11  ;;  %v245_v24 = vmul.f32 0.8, %v205_v63  ;;  %v1084_v29 = vor.u32 %v1277_v10, %v1081_v16  ;;  %v1291_v30 = vld [vmem:[#allocation2 + $0x144] sm:$0xf]  ;;  %v1137_v31 = vld [vmem:[#allocation2 + $0x148] sm:$0xf0]  ;;  %v1212_v37 = vor.u32 %v1309_v17, %v1209_v21  ;;  %p1447_p5 = scmp.lt.s32.totalorder %s1441_s12, %s1728_s2 }
  0x3c   : > { %769 = vmatpush.bf16.msrb.mxu0 %v1036_v58  ;;  %v261_v22 = vunpack.c.l.b16 %v209_v12  ;;  %v970_v23 = vadd.f32 -0.75, %v221_v13  ;;  %v228_v26 = vpack.c.bf16 %v969_v19, %v969_v19  ;;  %v240_v27 = vmul.f32 %v969_v19, %v232_v7  ;;  %v1641_v32 = vld [vmem:[#allocation2 + $0x44] sm:$0xf]  ;;  %v1393_v33 = vpop.eup %1392  ;;  %v1009_v38 = vld [vmem:[#allocation2 + $0x48] sm:$0xf0]  ;;  %s1442_s28 = scalar_lea.hbm %s1441_s12, 64 }
  0x3d   : > { %788 = vmatpush.bf16.msrb.mxu1 %v1100_v54  ;;  %v1275_v39 = vld [vmem:[#allocation2 + $0xc4] sm:$0xf]  ;;  %v1073_v40 = vld [vmem:[#allocation2 + $0xc8] sm:$0xf0]  ;;  %v198_v44 = vmul.f32 4.0, %v1393_v33  ;;  %v214_v45 = vmul.f32 1.875, %v1393_v33  ;;  %v1140_v48 = vor.u32 %v1291_v30, %v1137_v31  ;;  %v1012_v54 = vor.u32 %v1641_v32, %v1009_v38  ;;  %p1443_p1 = scmp.ne.s32.totalorder %s1441_s12, %s1442_s28 }
  0x3e   : > { %807 = vmatpush.bf16.msrb.mxu2 %v1164_v49  ;;  %v1643_v34 = vpack.c.b16 %v261_v22, %v260_v18  ;;  %v229_v35 = vpack.c.bf16 %v970_v23, %v970_v23  ;;  %v241_v36 = vmul.f32 %v970_v23, %v233_v14  ;;  %v270_v41 = vunpack.c.l.b16 %v228_v26  ;;  %v1307_v43 = vld [vmem:[#allocation2 + $0x1c4] sm:$0xf]  ;;  %v1201_v49 = vld [vmem:[#allocation2 + $0x1c8] sm:$0xf0]  ;;  %v1289_v50 = vld [vmem:[#allocation2 + $0x134] sm:$0xf]  ;;  %v1395_v52 = vpop.eup %1394 }
  0x3f   : > { %826 = vmatpush.bf16.msrb.mxu3 %v1228_v59  ;;  %v248_v42 = vsub.f32 %v240_v27, %v244_v20  ;;  %v1129_v51 = vld [vmem:[#allocation2 + $0x138] sm:$0xf0]  ;;  %v1076_v55 = vor.u32 %v1275_v39, %v1073_v40  ;;  %v206_v56 = vmul.f32 0.5, %v198_v44  ;;  %v1257_v57 = vld [vmem:[#allocation2 + $0x34] sm:$0xf]  ;;  %v199_v61 = vmul.f32 4.0, %v1395_v52  ;;  %p1444_p2 = pnand %p1443_p1, %p1571_p4 }
  0x40   : > { %770 = vmatpush.bf16.msrb.mxu0 %v1028_v1  ;;  %1231 = vmatmul.msk.bf16.vlgmr.msra.gmra.mxu1 %vm286_vm0, %v1643_v34  ;;  %v271_v46 = vunpack.c.l.b16 %v229_v35  ;;  %v249_v47 = vsub.f32 %v241_v36, %v245_v24  ;;  %v1001_v58 = vld [vmem:[#allocation2 + $0x38] sm:$0xf0]  ;;  %v215_v62 = vmul.f32 1.875, %v1395_v52  ;;  %v1273_v63 = vld [vmem:[#allocation2 + $0xb4] sm:$0xf]  ;;  %v1204_v2 = vor.u32 %v1307_v43, %v1201_v49  ;;  %s1446_s3 = scalar_lea.hbm %s1728_s2, 128 }
  0x41   : > { %789 = vmatpush.bf16.msrb.mxu1 %v1092_v8  ;;  %v252_v53 = vpack.c.bf16 %v248_v42, %v248_v42  ;;  %v222_v3 = vmul.f32 %v214_v45, %v206_v56  ;;  %v234_v4 = vmul.f32 1.8666667, %v1393_v33  ;;  %v1305_v5 = vld [vmem:[#allocation2 + $0x1b4] sm:$0xf]  ;;  %v207_v7 = vmul.f32 0.5, %v199_v61  ;;  %p1445_p3 = pneg %p1444_p2  ;;  %p1448_p6 = scmp.lt.s32.totalorder %s1446_s3, %s1442_s28 }
  0x42   : > { %808 = vmatpush.bf16.msrb.mxu2 %v1156_v0  ;;  %v1648_v59 = vpack.c.b16 %v271_v46, %v270_v41  ;;  %v253_v60 = vpack.c.bf16 %v249_v47, %v249_v47  ;;  %v1065_v0 = vld [vmem:[#allocation2 + $0xb8] sm:$0xf0]  ;;  %v210_v8 = vpack.c.bf16 %v206_v56, %v206_v56  ;;  %v1132_v9 = vor.u32 %v1289_v50, %v1129_v51  ;;  %v1287_v12 = vld [vmem:[#allocation2 + $0x124] sm:$0xf]  ;;  %v1121_v17 = vld [vmem:[#allocation2 + $0x128] sm:$0xf0] }
  0x43   : > { %827 = vmatpush.bf16.msrb.mxu3 %v1220_v15  ;;  %v280_v1 = vunpack.c.l.b16 %v252_v53  ;;  %v1193_v10 = vld [vmem:[#allocation2 + $0x1b8] sm:$0xf0]  ;;  %v971_v13 = vadd.f32 -0.75, %v222_v3  ;;  %v246_v14 = vmul.f32 0.8, %v206_v56  ;;  %v1004_v15 = vor.u32 %v1257_v57, %v1001_v58  ;;  %p1449_p7 = por %p1448_p6, %p1447_p5 }
  0x44   : > { %771 = vmatpush.bf16.msrb.mxu0 %v1020_v28  ;;  %1233 = vmatmul.msk.bf16.vlgmr.msra.gmra.mxu2 %vm286_vm0, %v1648_v59  ;;  %v281_v6 = vunpack.c.l.b16 %v253_v60  ;;  %v1068_v16 = vor.u32 %v1273_v63, %v1065_v0  ;;  %v211_v19 = vpack.c.bf16 %v207_v7, %v207_v7  ;;  %v223_v20 = vmul.f32 %v215_v62, %v207_v7  ;;  %v1255_v22 = vld [vmem:[#allocation2 + $0x24] sm:$0xf]  ;;  %v993_v23 = vld [vmem:[#allocation2 + $0x28] sm:$0xf0]  ;;  %v1285_v41 = vld [vmem:[#allocation2 + $0x114] sm:$0xf] }
  0x45   : > { %790 = vmatpush.bf16.msrb.mxu1 %v1084_v29  ;;  %v235_v21 = vmul.f32 1.8666667, %v1395_v52  ;;  %v230_v24 = vpack.c.bf16 %v971_v13, %v971_v13  ;;  %v1196_v26 = vor.u32 %v1305_v5, %v1193_v10  ;;  %v1271_v27 = vld [vmem:[#allocation2 + $0xa4] sm:$0xf]  ;;  %v1057_v28 = vld [vmem:[#allocation2 + $0xa8] sm:$0xf0]  ;;  %v262_v30 = vunpack.c.l.b16 %v210_v8  ;;  %p1450_p9 = pnand %p1449_p7, %p1445_p3 }
  0x46   : > { %809 = vmatpush.bf16.msrb.mxu2 %v1148_v25  ;;  %v1652_v18 = vpack.c.b16 %v281_v6, %v280_v1  ;;  %v242_v25 = vmul.f32 %v971_v13, %v234_v4  ;;  %v1303_v29 = vld [vmem:[#allocation2 + $0x1a4] sm:$0xf]  ;;  %v263_v31 = vunpack.c.l.b16 %v211_v19  ;;  %v972_v32 = vadd.f32 -0.75, %v223_v20  ;;  %v1185_v35 = vld [vmem:[#allocation2 + $0x1a8] sm:$0xf0] }
  0x47   : > { %828 = vmatpush.bf16.msrb.mxu3 %v1212_v37  ;;  %v247_v33 = vmul.f32 0.8, %v207_v7  ;;  %v1124_v37 = vor.u32 %v1287_v12, %v1121_v17  ;;  %v1060_v40 = vor.u32 %v1271_v27, %v1057_v28  ;;  %v1113_v42 = vld [vmem:[#allocation2 + $0x118] sm:$0xf0]  ;;  %v272_v43 = vunpack.c.l.b16 %v230_v24  ;;  %v1253_v46 = vld [vmem:[#allocation2 + $0x14] sm:$0xf] }
  0x48   : > { %772 = vmatpush.bf16.msrb.mxu0 %v1012_v54  ;;  %1235 = vmatmul.msk.bf16.vlgmr.msra.gmra.mxu3 %vm286_vm0, %v1652_v18  ;;  %v250_v36 = vsub.f32 %v242_v25, %v246_v14  ;;  %v231_v38 = vpack.c.bf16 %v972_v32, %v972_v32  ;;  %v243_v39 = vmul.f32 %v972_v32, %v235_v21  ;;  %v1269_v47 = vld [vmem:[#allocation2 + $0x94] sm:$0xf]  ;;  %v985_v53 = vld [vmem:[#allocation2 + $0x18] sm:$0xf0]  ;;  %v1283_v60 = vld [vmem:[#allocation2 + $0x104] sm:$0xf] }
  0x49   : > { %791 = vmatpush.bf16.msrb.mxu1 %v1076_v55  ;;  %v996_v44 = vor.u32 %v1255_v22, %v993_v23  ;;  %v1188_v45 = vor.u32 %v1303_v29, %v1185_v35  ;;  %v265_v49 = vpack.c.b16 %v263_v31, %v262_v30  ;;  %v1301_v54 = vld [vmem:[#allocation2 + $0x194] sm:$0xf]  ;;  %v1177_v55 = vld [vmem:[#allocation2 + $0x198] sm:$0xf0]  ;;  %v1116_v56 = vor.u32 %v1285_v41, %v1113_v42  ;;  %v1105_v61 = vld [vmem:[#allocation2 + $0x108] sm:$0xf0] }
  0x4a   : > { %810 = vmatpush.bf16.msrb.mxu2 %v1140_v48  ;;  %v1049_v48 = vld [vmem:[#allocation2 + $0x98] sm:$0xf0]  ;;  %v273_v50 = vunpack.c.l.b16 %v231_v38  ;;  %v251_v51 = vsub.f32 %v243_v39, %v247_v33  ;;  %v254_v52 = vpack.c.bf16 %v250_v36, %v250_v36  ;;  %v988_v62 = vor.u32 %v1253_v46, %v985_v53  ;;  %v1251_v0 = vld [vmem:[#allocation2 + $0x4] sm:$0xf]  ;;  %v977_v6 = vld [vmem:[#allocation2 + $0x8] sm:$0xf0] }
  0x4b   : > { %829 = vmatpush.bf16.msrb.mxu3 %v1204_v2  ;;  %1230 = vmatmul.msk.bf16.gmra.mxu0 %vm286_vm0, %v1513_v11  ;;  %v1052_v58 = vor.u32 %v1269_v47, %v1049_v48  ;;  %v1180_v63 = vor.u32 %v1301_v54, %v1177_v55  ;;  %v1267_v1 = vld [vmem:[#allocation2 + $0x84] sm:$0xf]  ;;  %v1041_v2 = vld [vmem:[#allocation2 + $0x88] sm:$0xf0]  ;;  %v980_v12 = vor.u32 %v1251_v0, %v977_v6 }
  0x4c   : > { %773 = vmatpush.bf16.msrb.mxu0 %v1004_v15  ;;  %v255_v57 = vpack.c.bf16 %v251_v51, %v251_v51  ;;  %v275_v3 = vpack.c.b16 %v273_v50, %v272_v43  ;;  %v282_v4 = vunpack.c.l.b16 %v254_v52  ;;  %v1299_v7 = vld [vmem:[#allocation2 + $0x184] sm:$0xf]  ;;  %v1169_v8 = vld [vmem:[#allocation2 + $0x188] sm:$0xf0]  ;;  %v1044_v10 = vor.u32 %v1267_v1, %v1041_v2 }
  0x4d   : > { %792 = vmatpush.bf16.msrb.mxu1 %v1068_v16  ;;  %v1172_v13 = vor.u32 %v1299_v7, %v1169_v8 }
  0x4e   : > { %811 = vmatpush.bf16.msrb.mxu2 %v1132_v9  ;;  %v283_v5 = vunpack.c.l.b16 %v255_v57  ;;  %v1108_v9 = vor.u32 %v1283_v60, %v1105_v61 }
  0x4f   : > { %830 = vmatpush.bf16.msrb.mxu3 %v1196_v26 }
  0x50   : > { %774 = vmatpush.bf16.msrb.mxu0 %v996_v44  ;;  %1232 = vmatmul.msk.bf16.gmra.mxu1 %vm286_vm0, %v265_v49  ;;  %v285_v14 = vpack.c.b16 %v283_v5, %v282_v4 }
  0x51   : > { %793 = vmatpush.bf16.msrb.mxu1 %v1060_v40 }
  0x52   : > { %812 = vmatpush.bf16.msrb.mxu2 %v1124_v37 }
  0x53   : > { %831 = vmatpush.bf16.msrb.mxu3 %v1188_v45 }
  0x54   : > { %775 = vmatpush.bf16.msrb.mxu0 %v988_v62  ;;  %1234 = vmatmul.msk.bf16.gmra.mxu2 %vm286_vm0, %v275_v3 }
  0x55   : > { %794 = vmatpush.bf16.msrb.mxu1 %v1052_v58 }
  0x56   : > { %813 = vmatpush.bf16.msrb.mxu2 %v1116_v56 }
  0x57   : > { %832 = vmatpush.bf16.msrb.mxu3 %v1180_v63 }
  0x58   : > { %776 = vmatpush.bf16.msrb.mxu0 %v980_v12  ;;  %1236 = vmatmul.msk.bf16.gmra.mxu3 %vm286_vm0, %v285_v14 }
  0x59   : > { %795 = vmatpush.bf16.msrb.mxu1 %v1044_v10 }
  0x5a   : > { %814 = vmatpush.bf16.msrb.mxu2 %v1108_v9 }
  0x5b   : > { %833 = vmatpush.bf16.msrb.mxu3 %v1172_v13  ;;  %1237 = vmatmul.msk.bf16.vlgmr.msrb.gmra.mxu0 %vm286_vm0, %v1513_v11 }
  0x60   : > { %1239 = vmatmul.msk.bf16.vlgmr.msrb.gmra.mxu1 %vm286_vm0, %v1643_v34 }
  0x64   : > { %1241 = vmatmul.msk.bf16.vlgmr.msrb.gmra.mxu2 %vm286_vm0, %v1648_v59 }
  0x68   : > { %1243 = vmatmul.msk.bf16.vlgmr.msrb.gmra.mxu3 %vm286_vm0, %v1652_v18 }
  0x6b   : > { %1238 = vmatmul.msk.bf16.gmra.mxu0 %vm286_vm0, %v1513_v11 }
  0x70   : > { %1240 = vmatmul.msk.bf16.gmra.mxu1 %vm286_vm0, %v265_v49 }
  0x74   : > { %1242 = vmatmul.msk.bf16.gmra.mxu2 %vm286_vm0, %v275_v3 }
  0x78   : > { %1244 = vmatmul.msk.bf16.gmra.mxu3 %vm286_vm0, %v285_v14 }
  0xb8   : > { %v702_v15 = vpop.f32.mrf.mxu0 }
  0xbd   : > { %v721_v16 = vpop.f32.mrf.mxu1 }
  0xbe   : > { %v722_v19 = vadd.f32 %v721_v16, %v702_v15 }
  0xc0   : > { %v704_v17 = vpop.f32.mrf.mxu0 }
  0xc5   : > { %v723_v34 = vpop.f32.mrf.mxu1 }
  0xc6   : > { %v724_v23 = vadd.f32 %v723_v34, %v704_v17 }
  0xc7   : > { %v740_v20 = vpop.f32.mrf.mxu2 }
  0xc8   : > { %v741_v59 = vadd.f32 %v740_v20, %v722_v19  ;;  %v707_v18 = vpop.f32.mrf.mxu0 }
  0xcb   : > { %v759_v21 = vpop.f32.mrf.mxu3 }
  0xcc   : > { %v760_v22 = vadd.f32 %v759_v21, %v741_v59 }
  0xcd   : > { %v726_v11 = vpop.f32.mrf.mxu1 }
  0xce   : > { %845 = vst [vmem:[%s1677_s16] sm:$0xff] %v760_v22  ;;  %v727_v29 = vadd.f32 %v726_v11, %v707_v18 }
  0xcf   : > { %v742_v24 = vpop.f32.mrf.mxu2 }
  0xd0   : > { %v743_v25 = vadd.f32 %v742_v24, %v724_v23  ;;  %v709_v26 = vpop.f32.mrf.mxu0 }
  0xd3   : > { %v761_v27 = vpop.f32.mrf.mxu3 }
  0xd4   : > { %v762_v28 = vadd.f32 %v761_v27, %v743_v25 }
  0xd5   : > { %v728_v30 = vpop.f32.mrf.mxu1 }
  0xd6   : > { %847 = vst [vmem:[%s1677_s16 + $0x10] sm:$0xff] %v762_v28  ;;  %v729_v38 = vadd.f32 %v728_v30, %v709_v26 }
  0xd7   : > { %v745_v31 = vpop.f32.mrf.mxu2 }
  0xd8   : > { %v746_v32 = vadd.f32 %v745_v31, %v727_v29  ;;  %v778_v36 = vpop.f32.mrf.mxu0 }
  0xdb   : > { %v764_v33 = vpop.f32.mrf.mxu3 }
  0xdc   : > { %v765_v35 = vadd.f32 %v764_v33, %v746_v32 }
  0xdd   : > { %v797_v37 = vpop.f32.mrf.mxu1 }
  0xde   : > { %849 = vst [vmem:[%s1677_s16 + $0x20] sm:$0xff] %v765_v35  ;;  %v798_v43 = vadd.f32 %v797_v37, %v778_v36 }
  0xdf   : > { %v747_v39 = vpop.f32.mrf.mxu2 }
  0xe0   : > { %v748_v40 = vadd.f32 %v747_v39, %v729_v38  ;;  %v780_v44 = vpop.f32.mrf.mxu0 }
  0xe3   : > { %v766_v41 = vpop.f32.mrf.mxu3 }
  0xe4   : > { %v767_v42 = vadd.f32 %v766_v41, %v748_v40 }
  0xe5   : > { %v799_v46 = vpop.f32.mrf.mxu1 }
  0xe6   : > { %851 = vst [vmem:[%s1677_s16 + $0x30] sm:$0xff] %v767_v42  ;;  %v800_v50 = vadd.f32 %v799_v46, %v780_v44 }
  0xe7   : > { %v816_v45 = vpop.f32.mrf.mxu2 }
  0xe8   : > { %v817_v47 = vadd.f32 %v816_v45, %v798_v43  ;;  %v783_v53 = vpop.f32.mrf.mxu0 }
  0xeb   : > { %v835_v48 = vpop.f32.mrf.mxu3 }
  0xec   : > { %v836_v49 = vadd.f32 %v835_v48, %v817_v47 }
  0xed   : > { %v802_v54 = vpop.f32.mrf.mxu1 }
  0xee   : > { %846 = vst [vmem:[%s1677_s16 + $0x8] sm:$0xff] %v836_v49  ;;  %v803_v57 = vadd.f32 %v802_v54, %v783_v53 }
  0xef   : > { %v818_v51 = vpop.f32.mrf.mxu2 }
  0xf0   : > { %v819_v52 = vadd.f32 %v818_v51, %v800_v50  ;;  %v785_v61 = vpop.f32.mrf.mxu0 }
  0xf3   : > { %v837_v55 = vpop.f32.mrf.mxu3 }
  0xf4   : > { %v838_v56 = vadd.f32 %v837_v55, %v819_v52 }
  0xf5   : > { %v804_v63 = vpop.f32.mrf.mxu1 }
  0xf6   : > { %848 = vst [vmem:[%s1677_s16 + $0x18] sm:$0xff] %v838_v56  ;;  %v805_v1 = vadd.f32 %v804_v63, %v785_v61 }
  0xf7   : > { %v821_v58 = vpop.f32.mrf.mxu2 }
  0xf8   : > { %v822_v60 = vadd.f32 %v821_v58, %v803_v57 }
  0xfb   : > { %v840_v62 = vpop.f32.mrf.mxu3 }
  0xfc   : > { %v841_v0 = vadd.f32 %v840_v62, %v822_v60 }
  0xfe   : > { %850 = vst [vmem:[%s1677_s16 + $0x28] sm:$0xff] %v841_v0 }
  0xff   : > { %v823_v2 = vpop.f32.mrf.mxu2 }
 0x100   : > { %v824_v3 = vadd.f32 %v823_v2, %v805_v1 }
 0x103   : > { %v842_v4 = vpop.f32.mrf.mxu3 }
 0x104   : > { %v843_v5 = vadd.f32 %v842_v4, %v824_v3 }
 0x106   : > { %852 = vst [vmem:[%s1677_s16 + $0x38] sm:$0xff] %v843_v5 }
 0x107   : > { %1453 = shalt.err (!%p1450_p9)
}
 0x108   : > { %s1514_s6 = smov 256   ;;  %s1515_s7 = smov 16  }
 0x109   : > { %1321 = dma.vmem_to_hbm [thread:$0]  (%p1571_p4), %s870_s25, 1024, %s872_s26, %s854_s27, %s1514_s6, %s1514_s6, %s1515_s7  }
 0x10a PF: > { %p1333_p10 = scmp.ge.s32.totalorder %s1508_s14, 2  ;;  %s886_s8 = sand.u32 1, %s1488_s9  }
 0x10b   : > { %s887_s15 = scalar_lea.sflag [#allocation4], %s886_s8 }
 0x10c   : > { %p1328_p11 = pnand %p1333_p10, %p1578_p8 }
 0x10e   : > { %p1329_p12 = pneg %p1328_p11 }
 0x110   : > { %1483 = dma.done.wait (%p1329_p12), %s887_s15, 1024  }
 0x111   : > { %1485 = vsyncadd (%p1329_p12), %s887_s15, 4294966272  ;;  %s16_s14 = sadd.s32 1, %s1508_s14   ;;  %s1732_s9 = smov %s1492_s10 }
 0x112   : > { %p13_p13 = scmp.ge.s32.totalorder %s16_s14, 4   ;;  %s1733_s10 = smov %s1496_s11 }
 0x113   : > { %s1734_s11 = smov %s1584_s22  ;;  %s1735_s12 = smov %s1504_s13 }
 0x114   : > { %s1736_s13 = smov %s1738_s17  ;;  %15 = sbr.rel (!%p13_p13) target bundleno = 5 (0x5), region = 69 }
 0x119   :  { %893 = vsyncpa [#allocation3], 1 }
 0x11a   :  { %895 = vsyncpa [#allocation3 + $0x1], 1 }
 0x11b   :  { %896 = vsyncpa [#allocation4], 1 }
 0x11c   :  { %898 = vsyncpa [#allocation4 + $0x1], 1 }

</bundles_post_ra>
